<compile_context>
chip_gen: v5e
topology: v5e:2x2
jax: 0.10.0
libtpu: 0.0.40
codegen_flags: <defaults>
</compile_context>

<pallas_src>
import functools

import jax
import jax.numpy as jnp
from jax.experimental import pallas as pl
from jax.experimental.pallas import tpu as pltpu

# ---- config (small, consistent with the module) ----
B  = 2    # batch
S  = 8    # sequence length
E  = 32   # hidden_size
H  = 4    # encoder_attention_heads
DH = E // H
FF = 64   # encoder_ffn_dim
SCALE = DH ** -0.5
EPS = 1e-5  # nn.LayerNorm default


def _layernorm(x, w, b):
    mu = jnp.mean(x, axis=-1, keepdims=True)
    var = jnp.mean((x - mu) ** 2, axis=-1, keepdims=True)
    return (x - mu) * jax.lax.rsqrt(var + EPS) * w + b


def encoder_layer_kernel(x_ref, vec_ref, qkv_w_ref, o_w_ref, f1_w_ref, f2_w_ref,
                         out_ref, *, nb):
    """Processes `nb` sequences at once; x_ref/out_ref are (nb*S, E)."""
    x = x_ref[...].astype(jnp.float32)                    # (N, E)

    # ---- unpack the (8, 128) slab of small vectors (all (1, width)) ----
    ln1_w = vec_ref[0:1, 0:E]
    ln1_b = vec_ref[1:2, 0:E]
    ln2_w = vec_ref[2:3, 0:E]
    ln2_b = vec_ref[3:4, 0:E]
    qkv_b = vec_ref[4:5, 0:3 * E]
    o_b   = vec_ref[5:6, 0:E]
    f1_b  = vec_ref[6:7, 0:FF]
    f2_b  = vec_ref[7:8, 0:E]

    # ---- self_attn_layer_norm ----
    h = _layernorm(x, ln1_w, ln1_b)

    # ---- fused QKV projection (bf16 operands, f32 accumulate) ----
    qkv = jnp.dot(h.astype(jnp.bfloat16), qkv_w_ref[...],
                  preferred_element_type=jnp.float32) + qkv_b       # (N, 3E)
    q = qkv[:, 0:E] * SCALE
    k = qkv[:, E:2 * E]
    v = qkv[:, 2 * E:3 * E]

    # ---- per-(batch, head) attention; results stay in registers ----
    seq_outs = []
    for bb in range(nb):
        rs = slice(bb * S, (bb + 1) * S)
        head_outs = []
        for hh in range(H):
            cs = slice(hh * DH, (hh + 1) * DH)
            qh = q[rs, cs].astype(jnp.bfloat16)
            kh = k[rs, cs].astype(jnp.bfloat16)
            vh = v[rs, cs].astype(jnp.bfloat16)
            # scores = qh @ kh^T, without an explicit transpose
            s = jax.lax.dot_general(qh, kh, (((1,), (1,)), ((), ())),
                                    preferred_element_type=jnp.float32)  # (S, S)
            s = s - jnp.max(s, axis=-1, keepdims=True)
            p = jnp.exp(s)
            p = p * pl.reciprocal(jnp.sum(p, axis=-1, keepdims=True), approx=True)
            head_outs.append(jnp.dot(p.astype(jnp.bfloat16), vh,
                                     preferred_element_type=jnp.float32))
        seq_outs.append(jnp.concatenate(head_outs, axis=-1))        # (S, E)
    attn = seq_outs[0] if nb == 1 else jnp.concatenate(seq_outs, axis=0)  # (N, E)

    # ---- output projection + residual ----
    attn = jnp.dot(attn.astype(jnp.bfloat16), o_w_ref[...],
                   preferred_element_type=jnp.float32) + o_b
    x = x + attn

    # ---- final_layer_norm + FFN + residual ----
    h = _layernorm(x, ln2_w, ln2_b)
    h1 = jnp.maximum(
        jnp.dot(h.astype(jnp.bfloat16), f1_w_ref[...],
                preferred_element_type=jnp.float32) + f1_b, 0.0)
    h2 = jnp.dot(h1.astype(jnp.bfloat16), f2_w_ref[...],
                 preferred_element_type=jnp.float32) + f2_b

    out_ref[...] = (x + h2).astype(out_ref.dtype)


def _pack_params(p):
    """bf16 weight matrices + one (8,128) f32 slab holding all small vectors."""
    qkv_w = jnp.concatenate([p["q_w"], p["k_w"], p["v_w"]], axis=1).astype(jnp.bfloat16)
    o_w  = p["o_w"].astype(jnp.bfloat16)
    f1_w = p["f1_w"].astype(jnp.bfloat16)
    f2_w = p["f2_w"].astype(jnp.bfloat16)

    qkv_b = jnp.concatenate(
        [p["q_b"].reshape(-1), p["k_b"].reshape(-1), p["v_b"].reshape(-1)])
    vec = jnp.zeros((8, 128), jnp.float32)
    vec = vec.at[0, :E].set(p["ln1_w"].reshape(-1))
    vec = vec.at[1, :E].set(p["ln1_b"].reshape(-1))
    vec = vec.at[2, :E].set(p["ln2_w"].reshape(-1))
    vec = vec.at[3, :E].set(p["ln2_b"].reshape(-1))
    vec = vec.at[4, :3 * E].set(qkv_b)
    vec = vec.at[5, :E].set(p["o_b"].reshape(-1))
    vec = vec.at[6, :FF].set(p["f1_b"].reshape(-1))
    vec = vec.at[7, :E].set(p["f2_b"].reshape(-1))
    return vec, qkv_w, o_w, f1_w, f2_w


def _has_multiple_tensorcores():
    """v7x has 2 TensorCores/chip; v5e/v6e have 1. Defaults to False if unsure."""
    try:
        kind = jax.devices()[0].device_kind.lower()
    except Exception:
        return False
    return ("v7" in kind) or ("7x" in kind)


def mbart_encoder_layer(x, params, batch_parallel=None):
    """x: (B, S, E) float32. params: dict of f32 weights (see init_params)."""
    assert x.shape == (B, S, E)
    if batch_parallel is None:
        batch_parallel = _has_multiple_tensorcores() and B > 1

    x2 = x.reshape(B * S, E)                       # free, row-major metadata only
    vec, qkv_w, o_w, f1_w, f2_w = _pack_params(params)

    if batch_parallel:
        # v7x: one batch element per TensorCore via a parallel batch grid.
        nb, grid, dim_sem = 1, (B,), ("parallel",)
        x_spec   = pl.BlockSpec((S, E), lambda b: (b, 0))
        out_spec = pl.BlockSpec((S, E), lambda b: (b, 0))
        wspec = lambda a: pl.BlockSpec(a.shape, lambda b: (0, 0))
    else:
        # v5e/v6e: single TensorCore -> collapse the batch grid into one step.
        nb, grid, dim_sem = B, (1,), ("arbitrary",)
        x_spec   = pl.BlockSpec((B * S, E), lambda i: (0, 0))
        out_spec = pl.BlockSpec((B * S, E), lambda i: (0, 0))
        wspec = lambda a: pl.BlockSpec(a.shape, lambda i: (0, 0))

    out2 = pl.pallas_call(
        functools.partial(encoder_layer_kernel, nb=nb),
        out_shape=jax.ShapeDtypeStruct((B * S, E), x.dtype),
        grid_spec=pltpu.PrefetchScalarGridSpec(
            num_scalar_prefetch=0,
            grid=grid,
            in_specs=[x_spec, wspec(vec), wspec(qkv_w), wspec(o_w),
                      wspec(f1_w), wspec(f2_w)],
            out_specs=out_spec,
        ),
        compiler_params=pltpu.CompilerParams(dimension_semantics=dim_sem),
    )(x2, vec, qkv_w, o_w, f1_w, f2_w)
    return out2.reshape(B, S, E)


def init_params(key):
    """Deterministic synthetic parameters. Linear weights stored as (in, out)."""
    ks = jax.random.split(key, 8)
    std = 0.02
    return {
        "ln1_w": jnp.ones((1, E), jnp.float32),
        "ln1_b": jnp.zeros((1, E), jnp.float32),
        "q_w": jax.random.normal(ks[0], (E, E), jnp.float32) * std,
        "q_b": jnp.zeros((1, E), jnp.float32),
        "k_w": jax.random.normal(ks[1], (E, E), jnp.float32) * std,
        "k_b": jnp.zeros((1, E), jnp.float32),
        "v_w": jax.random.normal(ks[2], (E, E), jnp.float32) * std,
        "v_b": jnp.zeros((1, E), jnp.float32),
        "o_w": jax.random.normal(ks[3], (E, E), jnp.float32) * std,
        "o_b": jnp.zeros((1, E), jnp.float32),
        "ln2_w": jnp.ones((1, E), jnp.float32),
        "ln2_b": jnp.zeros((1, E), jnp.float32),
        "f1_w": jax.random.normal(ks[4], (E, FF), jnp.float32) * std,
        "f1_b": jax.random.normal(ks[5], (1, FF), jnp.float32) * std,
        "f2_w": jax.random.normal(ks[6], (FF, E), jnp.float32) * std,
        "f2_b": jax.random.normal(ks[7], (1, E), jnp.float32) * std,
    }


def reference_forward(x, p):
    """Pure-JAX f32 reference mirroring the PyTorch forward (eval, no mask)."""
    def ln(v, w, b):
        mu = jnp.mean(v, -1, keepdims=True)
        var = jnp.mean((v - mu) ** 2, -1, keepdims=True)
        return (v - mu) / jnp.sqrt(var + EPS) * w + b

    residual = x
    h = ln(x, p["ln1_w"][0], p["ln1_b"][0])
    q = h @ p["q_w"] + p["q_b"][0]
    k = h @ p["k_w"] + p["k_b"][0]
    v = h @ p["v_w"] + p["v_b"][0]
    q = q.reshape(B, S, H, DH).transpose(0, 2, 1, 3)
    k = k.reshape(B, S, H, DH).transpose(0, 2, 1, 3)
    v = v.reshape(B, S, H, DH).transpose(0, 2, 1, 3)
    w = jnp.einsum("bhqd,bhkd->bhqk", q, k) * SCALE
    w = jax.nn.softmax(w, axis=-1)
    a = jnp.einsum("bhqk,bhkd->bhqd", w, v)
    a = a.transpose(0, 2, 1, 3).reshape(B, S, E)
    a = a @ p["o_w"] + p["o_b"][0]
    x = residual + a
    residual = x
    h = ln(x, p["ln2_w"][0], p["ln2_b"][0])
    h = jnp.maximum(h @ p["f1_w"] + p["f1_b"][0], 0.0)
    h = h @ p["f2_w"] + p["f2_b"][0]
    return residual + h


if __name__ == "__main__":
    key = jax.random.PRNGKey(0)
    k_x, k_p = jax.random.split(key)
    x = jax.random.normal(k_x, (B, S, E), jnp.float32)
    params = init_params(k_p)

    out = mbart_encoder_layer(x, params)
    out = jax.block_until_ready(out)

    ref = reference_forward(x, params)
    assert out.shape == (B, S, E)
    # Tolerance accounts for bf16 MXU operands + approx EUP reciprocal;
    # observed error is ~1e-3 abs while any structural bug is >> 1e-2.
    assert jnp.allclose(out, ref, atol=1e-2, rtol=1e-2), "mismatch vs reference"

    print("KERNEL_OK")
</pallas_src>

<mosaic_0001>
module attributes {stable_mosaic.version = 11 : i64} {
  func.func @encoder_layer_kernel(%arg0: i32, %arg1: memref<16x32xf32, #tpu.memory_space<vmem>>, %arg2: memref<8x128xf32, #tpu.memory_space<vmem>>, %arg3: memref<32x96xbf16, #tpu.memory_space<vmem>>, %arg4: memref<32x32xbf16, #tpu.memory_space<vmem>>, %arg5: memref<32x64xbf16, #tpu.memory_space<vmem>>, %arg6: memref<64x32xbf16, #tpu.memory_space<vmem>>, %arg7: memref<16x32xf32, #tpu.memory_space<vmem>>) attributes {dimension_semantics = [#tpu.dimension_semantics<arbitrary>], iteration_bounds = array<i64: 1>, scalar_prefetch = 0 : i64, scratch_operands = 0 : i64, tpu.core_type = #tpu.core_type<tc>, window_params = [{pipeline_mode = #tpu.pipeline_mode<synchronous>, transform_indices = @transform_0, window_bounds = array<i64: 16, 32>}, {pipeline_mode = #tpu.pipeline_mode<synchronous>, transform_indices = @transform_1, window_bounds = array<i64: 8, 128>}, {pipeline_mode = #tpu.pipeline_mode<synchronous>, transform_indices = @transform_2, window_bounds = array<i64: 32, 96>}, {pipeline_mode = #tpu.pipeline_mode<synchronous>, transform_indices = @transform_3, window_bounds = array<i64: 32, 32>}, {pipeline_mode = #tpu.pipeline_mode<synchronous>, transform_indices = @transform_4, window_bounds = array<i64: 32, 64>}, {pipeline_mode = #tpu.pipeline_mode<synchronous>, transform_indices = @transform_5, window_bounds = array<i64: 64, 32>}, {pipeline_mode = #tpu.pipeline_mode<synchronous>, transform_indices = @transform_6, window_bounds = array<i64: 16, 32>}]} {
    %c0 = arith.constant 0 : index
    %c0_0 = arith.constant 0 : index
    %0 = vector.load %arg1[%c0, %c0_0] : memref<16x32xf32, #tpu.memory_space<vmem>>, vector<16x32xf32>
    %c0_1 = arith.constant 0 : index
    %c0_2 = arith.constant 0 : index
    %1 = vector.load %arg2[%c0_1, %c0_2] : memref<8x128xf32, #tpu.memory_space<vmem>>, vector<1x32xf32>
    %c1 = arith.constant 1 : index
    %c0_3 = arith.constant 0 : index
    %2 = vector.load %arg2[%c1, %c0_3] : memref<8x128xf32, #tpu.memory_space<vmem>>, vector<1x32xf32>
    %c2 = arith.constant 2 : index
    %c0_4 = arith.constant 0 : index
    %3 = vector.load %arg2[%c2, %c0_4] : memref<8x128xf32, #tpu.memory_space<vmem>>, vector<1x32xf32>
    %c3 = arith.constant 3 : index
    %c0_5 = arith.constant 0 : index
    %4 = vector.load %arg2[%c3, %c0_5] : memref<8x128xf32, #tpu.memory_space<vmem>>, vector<1x32xf32>
    %c4 = arith.constant 4 : index
    %c0_6 = arith.constant 0 : index
    %5 = vector.load %arg2[%c4, %c0_6] : memref<8x128xf32, #tpu.memory_space<vmem>>, vector<1x96xf32>
    %c5 = arith.constant 5 : index
    %c0_7 = arith.constant 0 : index
    %6 = vector.load %arg2[%c5, %c0_7] : memref<8x128xf32, #tpu.memory_space<vmem>>, vector<1x32xf32>
    %c6 = arith.constant 6 : index
    %c0_8 = arith.constant 0 : index
    %7 = vector.load %arg2[%c6, %c0_8] : memref<8x128xf32, #tpu.memory_space<vmem>>, vector<1x64xf32>
    %c7 = arith.constant 7 : index
    %c0_9 = arith.constant 0 : index
    %8 = vector.load %arg2[%c7, %c0_9] : memref<8x128xf32, #tpu.memory_space<vmem>>, vector<1x32xf32>
    %cst = arith.constant dense<0.000000e+00> : vector<16xf32>
    %9 = vector.multi_reduction <add>, %0, %cst [1] : vector<16x32xf32> to vector<16xf32>
    %10 = vector.shape_cast %9 : vector<16xf32> to vector<16x1xf32>
    %cst_10 = arith.constant 3.200000e+01 : f32
    %11 = vector.broadcast %cst_10 : f32 to vector<16x1xf32>
    %12 = arith.divf %10, %11 : vector<16x1xf32>
    %13 = vector.broadcast %12 : vector<16x1xf32> to vector<16x32xf32>
    %14 = arith.subf %0, %13 : vector<16x32xf32>
    %15 = arith.mulf %14, %14 : vector<16x32xf32>
    %cst_11 = arith.constant dense<0.000000e+00> : vector<16xf32>
    %16 = vector.multi_reduction <add>, %15, %cst_11 [1] : vector<16x32xf32> to vector<16xf32>
    %17 = vector.shape_cast %16 : vector<16xf32> to vector<16x1xf32>
    %cst_12 = arith.constant 3.200000e+01 : f32
    %18 = vector.broadcast %cst_12 : f32 to vector<16x1xf32>
    %19 = arith.divf %17, %18 : vector<16x1xf32>
    %20 = vector.broadcast %12 : vector<16x1xf32> to vector<16x32xf32>
    %21 = arith.subf %0, %20 : vector<16x32xf32>
    %cst_13 = arith.constant 9.99999974E-6 : f32
    %22 = vector.broadcast %cst_13 : f32 to vector<16x1xf32>
    %23 = arith.addf %19, %22 : vector<16x1xf32>
    %24 = math.rsqrt %23 : vector<16x1xf32>
    %25 = vector.broadcast %24 : vector<16x1xf32> to vector<16x32xf32>
    %26 = arith.mulf %21, %25 : vector<16x32xf32>
    %27 = vector.broadcast %1 : vector<1x32xf32> to vector<16x32xf32>
    %28 = arith.mulf %26, %27 : vector<16x32xf32>
    %29 = vector.broadcast %2 : vector<1x32xf32> to vector<16x32xf32>
    %30 = arith.addf %28, %29 : vector<16x32xf32>
    %31 = arith.truncf %30 : vector<16x32xf32> to vector<16x32xbf16>
    %c0_14 = arith.constant 0 : index
    %c0_15 = arith.constant 0 : index
    %32 = vector.load %arg3[%c0_14, %c0_15] : memref<32x96xbf16, #tpu.memory_space<vmem>>, vector<32x96xbf16>
    %cst_16 = arith.constant dense<0.000000e+00> : vector<16x96xf32>
    %33 = tpu.matmul %31, %32, %cst_16 {dimension_numbers = #tpu.dot_dimension_numbers<[1], [0], [0], [1], [0, 0, 1, 1], [], []>} : vector<16x32xbf16>, vector<32x96xbf16>, vector<16x96xf32> -> vector<16x96xf32>
    %34 = vector.broadcast %5 : vector<1x96xf32> to vector<16x96xf32>
    %35 = arith.addf %33, %34 : vector<16x96xf32>
    %36 = vector.extract_strided_slice %35 {offsets = [0, 0], sizes = [16, 32], strides = [1, 1]} : vector<16x96xf32> to vector<16x32xf32>
    %cst_17 = arith.constant 0.353553385 : f32
    %37 = vector.broadcast %cst_17 : f32 to vector<16x32xf32>
    %38 = arith.mulf %36, %37 : vector<16x32xf32>
    %39 = vector.extract_strided_slice %35 {offsets = [0, 32], sizes = [16, 32], strides = [1, 1]} : vector<16x96xf32> to vector<16x32xf32>
    %40 = vector.extract_strided_slice %35 {offsets = [0, 64], sizes = [16, 32], strides = [1, 1]} : vector<16x96xf32> to vector<16x32xf32>
    %41 = vector.extract_strided_slice %38 {offsets = [0, 0], sizes = [8, 8], strides = [1, 1]} : vector<16x32xf32> to vector<8x8xf32>
    %42 = arith.truncf %41 : vector<8x8xf32> to vector<8x8xbf16>
    %43 = vector.extract_strided_slice %39 {offsets = [0, 0], sizes = [8, 8], strides = [1, 1]} : vector<16x32xf32> to vector<8x8xf32>
    %44 = arith.truncf %43 : vector<8x8xf32> to vector<8x8xbf16>
    %45 = vector.extract_strided_slice %40 {offsets = [0, 0], sizes = [8, 8], strides = [1, 1]} : vector<16x32xf32> to vector<8x8xf32>
    %46 = arith.truncf %45 : vector<8x8xf32> to vector<8x8xbf16>
    %cst_18 = arith.constant dense<0.000000e+00> : vector<8x8xf32>
    %47 = tpu.matmul %42, %44, %cst_18 {dimension_numbers = #tpu.dot_dimension_numbers<[1], [1], [0], [0], [0, 0, 1, 0], [], []>} : vector<8x8xbf16>, vector<8x8xbf16>, vector<8x8xf32> -> vector<8x8xf32>
    %cst_19 = arith.constant dense<0xFF800000> : vector<8xf32>
    %48 = vector.multi_reduction <maximumf>, %47, %cst_19 [1] : vector<8x8xf32> to vector<8xf32>
    %49 = vector.shape_cast %48 : vector<8xf32> to vector<8x1xf32>
    %50 = vector.broadcast %49 : vector<8x1xf32> to vector<8x8xf32>
    %51 = arith.subf %47, %50 : vector<8x8xf32>
    %52 = math.exp %51 : vector<8x8xf32>
    %cst_20 = arith.constant dense<0.000000e+00> : vector<8xf32>
    %53 = vector.multi_reduction <add>, %52, %cst_20 [1] : vector<8x8xf32> to vector<8xf32>
    %54 = vector.shape_cast %53 : vector<8xf32> to vector<8x1xf32>
    %55 = tpu.reciprocal %54 {approx = true} : vector<8x1xf32> -> vector<8x1xf32>
    %56 = vector.broadcast %55 : vector<8x1xf32> to vector<8x8xf32>
    %57 = arith.mulf %52, %56 : vector<8x8xf32>
    %58 = arith.truncf %57 : vector<8x8xf32> to vector<8x8xbf16>
    %cst_21 = arith.constant dense<0.000000e+00> : vector<8x8xf32>
    %59 = tpu.matmul %58, %46, %cst_21 {dimension_numbers = #tpu.dot_dimension_numbers<[1], [0], [0], [1], [0, 0, 1, 1], [], []>} : vector<8x8xbf16>, vector<8x8xbf16>, vector<8x8xf32> -> vector<8x8xf32>
    %60 = vector.extract_strided_slice %38 {offsets = [0, 8], sizes = [8, 8], strides = [1, 1]} : vector<16x32xf32> to vector<8x8xf32>
    %61 = arith.truncf %60 : vector<8x8xf32> to vector<8x8xbf16>
    %62 = vector.extract_strided_slice %39 {offsets = [0, 8], sizes = [8, 8], strides = [1, 1]} : vector<16x32xf32> to vector<8x8xf32>
    %63 = arith.truncf %62 : vector<8x8xf32> to vector<8x8xbf16>
    %64 = vector.extract_strided_slice %40 {offsets = [0, 8], sizes = [8, 8], strides = [1, 1]} : vector<16x32xf32> to vector<8x8xf32>
    %65 = arith.truncf %64 : vector<8x8xf32> to vector<8x8xbf16>
    %cst_22 = arith.constant dense<0.000000e+00> : vector<8x8xf32>
    %66 = tpu.matmul %61, %63, %cst_22 {dimension_numbers = #tpu.dot_dimension_numbers<[1], [1], [0], [0], [0, 0, 1, 0], [], []>} : vector<8x8xbf16>, vector<8x8xbf16>, vector<8x8xf32> -> vector<8x8xf32>
    %cst_23 = arith.constant dense<0xFF800000> : vector<8xf32>
    %67 = vector.multi_reduction <maximumf>, %66, %cst_23 [1] : vector<8x8xf32> to vector<8xf32>
    %68 = vector.shape_cast %67 : vector<8xf32> to vector<8x1xf32>
    %69 = vector.broadcast %68 : vector<8x1xf32> to vector<8x8xf32>
    %70 = arith.subf %66, %69 : vector<8x8xf32>
    %71 = math.exp %70 : vector<8x8xf32>
    %cst_24 = arith.constant dense<0.000000e+00> : vector<8xf32>
    %72 = vector.multi_reduction <add>, %71, %cst_24 [1] : vector<8x8xf32> to vector<8xf32>
    %73 = vector.shape_cast %72 : vector<8xf32> to vector<8x1xf32>
    %74 = tpu.reciprocal %73 {approx = true} : vector<8x1xf32> -> vector<8x1xf32>
    %75 = vector.broadcast %74 : vector<8x1xf32> to vector<8x8xf32>
    %76 = arith.mulf %71, %75 : vector<8x8xf32>
    %77 = arith.truncf %76 : vector<8x8xf32> to vector<8x8xbf16>
    %cst_25 = arith.constant dense<0.000000e+00> : vector<8x8xf32>
    %78 = tpu.matmul %77, %65, %cst_25 {dimension_numbers = #tpu.dot_dimension_numbers<[1], [0], [0], [1], [0, 0, 1, 1], [], []>} : vector<8x8xbf16>, vector<8x8xbf16>, vector<8x8xf32> -> vector<8x8xf32>
    %79 = vector.extract_strided_slice %38 {offsets = [0, 16], sizes = [8, 8], strides = [1, 1]} : vector<16x32xf32> to vector<8x8xf32>
    %80 = arith.truncf %79 : vector<8x8xf32> to vector<8x8xbf16>
    %81 = vector.extract_strided_slice %39 {offsets = [0, 16], sizes = [8, 8], strides = [1, 1]} : vector<16x32xf32> to vector<8x8xf32>
    %82 = arith.truncf %81 : vector<8x8xf32> to vector<8x8xbf16>
    %83 = vector.extract_strided_slice %40 {offsets = [0, 16], sizes = [8, 8], strides = [1, 1]} : vector<16x32xf32> to vector<8x8xf32>
    %84 = arith.truncf %83 : vector<8x8xf32> to vector<8x8xbf16>
    %cst_26 = arith.constant dense<0.000000e+00> : vector<8x8xf32>
    %85 = tpu.matmul %80, %82, %cst_26 {dimension_numbers = #tpu.dot_dimension_numbers<[1], [1], [0], [0], [0, 0, 1, 0], [], []>} : vector<8x8xbf16>, vector<8x8xbf16>, vector<8x8xf32> -> vector<8x8xf32>
    %cst_27 = arith.constant dense<0xFF800000> : vector<8xf32>
    %86 = vector.multi_reduction <maximumf>, %85, %cst_27 [1] : vector<8x8xf32> to vector<8xf32>
    %87 = vector.shape_cast %86 : vector<8xf32> to vector<8x1xf32>
    %88 = vector.broadcast %87 : vector<8x1xf32> to vector<8x8xf32>
    %89 = arith.subf %85, %88 : vector<8x8xf32>
    %90 = math.exp %89 : vector<8x8xf32>
    %cst_28 = arith.constant dense<0.000000e+00> : vector<8xf32>
    %91 = vector.multi_reduction <add>, %90, %cst_28 [1] : vector<8x8xf32> to vector<8xf32>
    %92 = vector.shape_cast %91 : vector<8xf32> to vector<8x1xf32>
    %93 = tpu.reciprocal %92 {approx = true} : vector<8x1xf32> -> vector<8x1xf32>
    %94 = vector.broadcast %93 : vector<8x1xf32> to vector<8x8xf32>
    %95 = arith.mulf %90, %94 : vector<8x8xf32>
    %96 = arith.truncf %95 : vector<8x8xf32> to vector<8x8xbf16>
    %cst_29 = arith.constant dense<0.000000e+00> : vector<8x8xf32>
    %97 = tpu.matmul %96, %84, %cst_29 {dimension_numbers = #tpu.dot_dimension_numbers<[1], [0], [0], [1], [0, 0, 1, 1], [], []>} : vector<8x8xbf16>, vector<8x8xbf16>, vector<8x8xf32> -> vector<8x8xf32>
    %98 = vector.extract_strided_slice %38 {offsets = [0, 24], sizes = [8, 8], strides = [1, 1]} : vector<16x32xf32> to vector<8x8xf32>
    %99 = arith.truncf %98 : vector<8x8xf32> to vector<8x8xbf16>
    %100 = vector.extract_strided_slice %39 {offsets = [0, 24], sizes = [8, 8], strides = [1, 1]} : vector<16x32xf32> to vector<8x8xf32>
    %101 = arith.truncf %100 : vector<8x8xf32> to vector<8x8xbf16>
    %102 = vector.extract_strided_slice %40 {offsets = [0, 24], sizes = [8, 8], strides = [1, 1]} : vector<16x32xf32> to vector<8x8xf32>
    %103 = arith.truncf %102 : vector<8x8xf32> to vector<8x8xbf16>
    %cst_30 = arith.constant dense<0.000000e+00> : vector<8x8xf32>
    %104 = tpu.matmul %99, %101, %cst_30 {dimension_numbers = #tpu.dot_dimension_numbers<[1], [1], [0], [0], [0, 0, 1, 0], [], []>} : vector<8x8xbf16>, vector<8x8xbf16>, vector<8x8xf32> -> vector<8x8xf32>
    %cst_31 = arith.constant dense<0xFF800000> : vector<8xf32>
    %105 = vector.multi_reduction <maximumf>, %104, %cst_31 [1] : vector<8x8xf32> to vector<8xf32>
    %106 = vector.shape_cast %105 : vector<8xf32> to vector<8x1xf32>
    %107 = vector.broadcast %106 : vector<8x1xf32> to vector<8x8xf32>
    %108 = arith.subf %104, %107 : vector<8x8xf32>
    %109 = math.exp %108 : vector<8x8xf32>
    %cst_32 = arith.constant dense<0.000000e+00> : vector<8xf32>
    %110 = vector.multi_reduction <add>, %109, %cst_32 [1] : vector<8x8xf32> to vector<8xf32>
    %111 = vector.shape_cast %110 : vector<8xf32> to vector<8x1xf32>
    %112 = tpu.reciprocal %111 {approx = true} : vector<8x1xf32> -> vector<8x1xf32>
    %113 = vector.broadcast %112 : vector<8x1xf32> to vector<8x8xf32>
    %114 = arith.mulf %109, %113 : vector<8x8xf32>
    %115 = arith.truncf %114 : vector<8x8xf32> to vector<8x8xbf16>
    %cst_33 = arith.constant dense<0.000000e+00> : vector<8x8xf32>
    %116 = tpu.matmul %115, %103, %cst_33 {dimension_numbers = #tpu.dot_dimension_numbers<[1], [0], [0], [1], [0, 0, 1, 1], [], []>} : vector<8x8xbf16>, vector<8x8xbf16>, vector<8x8xf32> -> vector<8x8xf32>
    %117 = tpu.concatenate %59, %78, %97, %116 in 1 : vector<8x8xf32>, vector<8x8xf32>, vector<8x8xf32>, vector<8x8xf32> -> vector<8x32xf32>
    %118 = vector.extract_strided_slice %38 {offsets = [8, 0], sizes = [8, 8], strides = [1, 1]} : vector<16x32xf32> to vector<8x8xf32>
    %119 = arith.truncf %118 : vector<8x8xf32> to vector<8x8xbf16>
    %120 = vector.extract_strided_slice %39 {offsets = [8, 0], sizes = [8, 8], strides = [1, 1]} : vector<16x32xf32> to vector<8x8xf32>
    %121 = arith.truncf %120 : vector<8x8xf32> to vector<8x8xbf16>
    %122 = vector.extract_strided_slice %40 {offsets = [8, 0], sizes = [8, 8], strides = [1, 1]} : vector<16x32xf32> to vector<8x8xf32>
    %123 = arith.truncf %122 : vector<8x8xf32> to vector<8x8xbf16>
    %cst_34 = arith.constant dense<0.000000e+00> : vector<8x8xf32>
    %124 = tpu.matmul %119, %121, %cst_34 {dimension_numbers = #tpu.dot_dimension_numbers<[1], [1], [0], [0], [0, 0, 1, 0], [], []>} : vector<8x8xbf16>, vector<8x8xbf16>, vector<8x8xf32> -> vector<8x8xf32>
    %cst_35 = arith.constant dense<0xFF800000> : vector<8xf32>
    %125 = vector.multi_reduction <maximumf>, %124, %cst_35 [1] : vector<8x8xf32> to vector<8xf32>
    %126 = vector.shape_cast %125 : vector<8xf32> to vector<8x1xf32>
    %127 = vector.broadcast %126 : vector<8x1xf32> to vector<8x8xf32>
    %128 = arith.subf %124, %127 : vector<8x8xf32>
    %129 = math.exp %128 : vector<8x8xf32>
    %cst_36 = arith.constant dense<0.000000e+00> : vector<8xf32>
    %130 = vector.multi_reduction <add>, %129, %cst_36 [1] : vector<8x8xf32> to vector<8xf32>
    %131 = vector.shape_cast %130 : vector<8xf32> to vector<8x1xf32>
    %132 = tpu.reciprocal %131 {approx = true} : vector<8x1xf32> -> vector<8x1xf32>
    %133 = vector.broadcast %132 : vector<8x1xf32> to vector<8x8xf32>
    %134 = arith.mulf %129, %133 : vector<8x8xf32>
    %135 = arith.truncf %134 : vector<8x8xf32> to vector<8x8xbf16>
    %cst_37 = arith.constant dense<0.000000e+00> : vector<8x8xf32>
    %136 = tpu.matmul %135, %123, %cst_37 {dimension_numbers = #tpu.dot_dimension_numbers<[1], [0], [0], [1], [0, 0, 1, 1], [], []>} : vector<8x8xbf16>, vector<8x8xbf16>, vector<8x8xf32> -> vector<8x8xf32>
    %137 = vector.extract_strided_slice %38 {offsets = [8, 8], sizes = [8, 8], strides = [1, 1]} : vector<16x32xf32> to vector<8x8xf32>
    %138 = arith.truncf %137 : vector<8x8xf32> to vector<8x8xbf16>
    %139 = vector.extract_strided_slice %39 {offsets = [8, 8], sizes = [8, 8], strides = [1, 1]} : vector<16x32xf32> to vector<8x8xf32>
    %140 = arith.truncf %139 : vector<8x8xf32> to vector<8x8xbf16>
    %141 = vector.extract_strided_slice %40 {offsets = [8, 8], sizes = [8, 8], strides = [1, 1]} : vector<16x32xf32> to vector<8x8xf32>
    %142 = arith.truncf %141 : vector<8x8xf32> to vector<8x8xbf16>
    %cst_38 = arith.constant dense<0.000000e+00> : vector<8x8xf32>
    %143 = tpu.matmul %138, %140, %cst_38 {dimension_numbers = #tpu.dot_dimension_numbers<[1], [1], [0], [0], [0, 0, 1, 0], [], []>} : vector<8x8xbf16>, vector<8x8xbf16>, vector<8x8xf32> -> vector<8x8xf32>
    %cst_39 = arith.constant dense<0xFF800000> : vector<8xf32>
    %144 = vector.multi_reduction <maximumf>, %143, %cst_39 [1] : vector<8x8xf32> to vector<8xf32>
    %145 = vector.shape_cast %144 : vector<8xf32> to vector<8x1xf32>
    %146 = vector.broadcast %145 : vector<8x1xf32> to vector<8x8xf32>
    %147 = arith.subf %143, %146 : vector<8x8xf32>
    %148 = math.exp %147 : vector<8x8xf32>
    %cst_40 = arith.constant dense<0.000000e+00> : vector<8xf32>
    %149 = vector.multi_reduction <add>, %148, %cst_40 [1] : vector<8x8xf32> to vector<8xf32>
    %150 = vector.shape_cast %149 : vector<8xf32> to vector<8x1xf32>
    %151 = tpu.reciprocal %150 {approx = true} : vector<8x1xf32> -> vector<8x1xf32>
    %152 = vector.broadcast %151 : vector<8x1xf32> to vector<8x8xf32>
    %153 = arith.mulf %148, %152 : vector<8x8xf32>
    %154 = arith.truncf %153 : vector<8x8xf32> to vector<8x8xbf16>
    %cst_41 = arith.constant dense<0.000000e+00> : vector<8x8xf32>
    %155 = tpu.matmul %154, %142, %cst_41 {dimension_numbers = #tpu.dot_dimension_numbers<[1], [0], [0], [1], [0, 0, 1, 1], [], []>} : vector<8x8xbf16>, vector<8x8xbf16>, vector<8x8xf32> -> vector<8x8xf32>
    %156 = vector.extract_strided_slice %38 {offsets = [8, 16], sizes = [8, 8], strides = [1, 1]} : vector<16x32xf32> to vector<8x8xf32>
    %157 = arith.truncf %156 : vector<8x8xf32> to vector<8x8xbf16>
    %158 = vector.extract_strided_slice %39 {offsets = [8, 16], sizes = [8, 8], strides = [1, 1]} : vector<16x32xf32> to vector<8x8xf32>
    %159 = arith.truncf %158 : vector<8x8xf32> to vector<8x8xbf16>
    %160 = vector.extract_strided_slice %40 {offsets = [8, 16], sizes = [8, 8], strides = [1, 1]} : vector<16x32xf32> to vector<8x8xf32>
    %161 = arith.truncf %160 : vector<8x8xf32> to vector<8x8xbf16>
    %cst_42 = arith.constant dense<0.000000e+00> : vector<8x8xf32>
    %162 = tpu.matmul %157, %159, %cst_42 {dimension_numbers = #tpu.dot_dimension_numbers<[1], [1], [0], [0], [0, 0, 1, 0], [], []>} : vector<8x8xbf16>, vector<8x8xbf16>, vector<8x8xf32> -> vector<8x8xf32>
    %cst_43 = arith.constant dense<0xFF800000> : vector<8xf32>
    %163 = vector.multi_reduction <maximumf>, %162, %cst_43 [1] : vector<8x8xf32> to vector<8xf32>
    %164 = vector.shape_cast %163 : vector<8xf32> to vector<8x1xf32>
    %165 = vector.broadcast %164 : vector<8x1xf32> to vector<8x8xf32>
    %166 = arith.subf %162, %165 : vector<8x8xf32>
    %167 = math.exp %166 : vector<8x8xf32>
    %cst_44 = arith.constant dense<0.000000e+00> : vector<8xf32>
    %168 = vector.multi_reduction <add>, %167, %cst_44 [1] : vector<8x8xf32> to vector<8xf32>
    %169 = vector.shape_cast %168 : vector<8xf32> to vector<8x1xf32>
    %170 = tpu.reciprocal %169 {approx = true} : vector<8x1xf32> -> vector<8x1xf32>
    %171 = vector.broadcast %170 : vector<8x1xf32> to vector<8x8xf32>
    %172 = arith.mulf %167, %171 : vector<8x8xf32>
    %173 = arith.truncf %172 : vector<8x8xf32> to vector<8x8xbf16>
    %cst_45 = arith.constant dense<0.000000e+00> : vector<8x8xf32>
    %174 = tpu.matmul %173, %161, %cst_45 {dimension_numbers = #tpu.dot_dimension_numbers<[1], [0], [0], [1], [0, 0, 1, 1], [], []>} : vector<8x8xbf16>, vector<8x8xbf16>, vector<8x8xf32> -> vector<8x8xf32>
    %175 = vector.extract_strided_slice %38 {offsets = [8, 24], sizes = [8, 8], strides = [1, 1]} : vector<16x32xf32> to vector<8x8xf32>
    %176 = arith.truncf %175 : vector<8x8xf32> to vector<8x8xbf16>
    %177 = vector.extract_strided_slice %39 {offsets = [8, 24], sizes = [8, 8], strides = [1, 1]} : vector<16x32xf32> to vector<8x8xf32>
    %178 = arith.truncf %177 : vector<8x8xf32> to vector<8x8xbf16>
    %179 = vector.extract_strided_slice %40 {offsets = [8, 24], sizes = [8, 8], strides = [1, 1]} : vector<16x32xf32> to vector<8x8xf32>
    %180 = arith.truncf %179 : vector<8x8xf32> to vector<8x8xbf16>
    %cst_46 = arith.constant dense<0.000000e+00> : vector<8x8xf32>
    %181 = tpu.matmul %176, %178, %cst_46 {dimension_numbers = #tpu.dot_dimension_numbers<[1], [1], [0], [0], [0, 0, 1, 0], [], []>} : vector<8x8xbf16>, vector<8x8xbf16>, vector<8x8xf32> -> vector<8x8xf32>
    %cst_47 = arith.constant dense<0xFF800000> : vector<8xf32>
    %182 = vector.multi_reduction <maximumf>, %181, %cst_47 [1] : vector<8x8xf32> to vector<8xf32>
    %183 = vector.shape_cast %182 : vector<8xf32> to vector<8x1xf32>
    %184 = vector.broadcast %183 : vector<8x1xf32> to vector<8x8xf32>
    %185 = arith.subf %181, %184 : vector<8x8xf32>
    %186 = math.exp %185 : vector<8x8xf32>
    %cst_48 = arith.constant dense<0.000000e+00> : vector<8xf32>
    %187 = vector.multi_reduction <add>, %186, %cst_48 [1] : vector<8x8xf32> to vector<8xf32>
    %188 = vector.shape_cast %187 : vector<8xf32> to vector<8x1xf32>
    %189 = tpu.reciprocal %188 {approx = true} : vector<8x1xf32> -> vector<8x1xf32>
    %190 = vector.broadcast %189 : vector<8x1xf32> to vector<8x8xf32>
    %191 = arith.mulf %186, %190 : vector<8x8xf32>
    %192 = arith.truncf %191 : vector<8x8xf32> to vector<8x8xbf16>
    %cst_49 = arith.constant dense<0.000000e+00> : vector<8x8xf32>
    %193 = tpu.matmul %192, %180, %cst_49 {dimension_numbers = #tpu.dot_dimension_numbers<[1], [0], [0], [1], [0, 0, 1, 1], [], []>} : vector<8x8xbf16>, vector<8x8xbf16>, vector<8x8xf32> -> vector<8x8xf32>
    %194 = tpu.concatenate %136, %155, %174, %193 in 1 : vector<8x8xf32>, vector<8x8xf32>, vector<8x8xf32>, vector<8x8xf32> -> vector<8x32xf32>
    %195 = tpu.concatenate %117, %194 in 0 : vector<8x32xf32>, vector<8x32xf32> -> vector<16x32xf32>
    %196 = arith.truncf %195 : vector<16x32xf32> to vector<16x32xbf16>
    %c0_50 = arith.constant 0 : index
    %c0_51 = arith.constant 0 : index
    %197 = vector.load %arg4[%c0_50, %c0_51] : memref<32x32xbf16, #tpu.memory_space<vmem>>, vector<32x32xbf16>
    %cst_52 = arith.constant dense<0.000000e+00> : vector<16x32xf32>
    %198 = tpu.matmul %196, %197, %cst_52 {dimension_numbers = #tpu.dot_dimension_numbers<[1], [0], [0], [1], [0, 0, 1, 1], [], []>} : vector<16x32xbf16>, vector<32x32xbf16>, vector<16x32xf32> -> vector<16x32xf32>
    %199 = vector.broadcast %6 : vector<1x32xf32> to vector<16x32xf32>
    %200 = arith.addf %198, %199 : vector<16x32xf32>
    %201 = arith.addf %0, %200 : vector<16x32xf32>
    %cst_53 = arith.constant dense<0.000000e+00> : vector<16xf32>
    %202 = vector.multi_reduction <add>, %201, %cst_53 [1] : vector<16x32xf32> to vector<16xf32>
    %203 = vector.shape_cast %202 : vector<16xf32> to vector<16x1xf32>
    %cst_54 = arith.constant 3.200000e+01 : f32
    %204 = vector.broadcast %cst_54 : f32 to vector<16x1xf32>
    %205 = arith.divf %203, %204 : vector<16x1xf32>
    %206 = vector.broadcast %205 : vector<16x1xf32> to vector<16x32xf32>
    %207 = arith.subf %201, %206 : vector<16x32xf32>
    %208 = arith.mulf %207, %207 : vector<16x32xf32>
    %cst_55 = arith.constant dense<0.000000e+00> : vector<16xf32>
    %209 = vector.multi_reduction <add>, %208, %cst_55 [1] : vector<16x32xf32> to vector<16xf32>
    %210 = vector.shape_cast %209 : vector<16xf32> to vector<16x1xf32>
    %cst_56 = arith.constant 3.200000e+01 : f32
    %211 = vector.broadcast %cst_56 : f32 to vector<16x1xf32>
    %212 = arith.divf %210, %211 : vector<16x1xf32>
    %213 = vector.broadcast %205 : vector<16x1xf32> to vector<16x32xf32>
    %214 = arith.subf %201, %213 : vector<16x32xf32>
    %cst_57 = arith.constant 9.99999974E-6 : f32
    %215 = vector.broadcast %cst_57 : f32 to vector<16x1xf32>
    %216 = arith.addf %212, %215 : vector<16x1xf32>
    %217 = math.rsqrt %216 : vector<16x1xf32>
    %218 = vector.broadcast %217 : vector<16x1xf32> to vector<16x32xf32>
    %219 = arith.mulf %214, %218 : vector<16x32xf32>
    %220 = vector.broadcast %3 : vector<1x32xf32> to vector<16x32xf32>
    %221 = arith.mulf %219, %220 : vector<16x32xf32>
    %222 = vector.broadcast %4 : vector<1x32xf32> to vector<16x32xf32>
    %223 = arith.addf %221, %222 : vector<16x32xf32>
    %224 = arith.truncf %223 : vector<16x32xf32> to vector<16x32xbf16>
    %c0_58 = arith.constant 0 : index
    %c0_59 = arith.constant 0 : index
    %225 = vector.load %arg5[%c0_58, %c0_59] : memref<32x64xbf16, #tpu.memory_space<vmem>>, vector<32x64xbf16>
    %cst_60 = arith.constant dense<0.000000e+00> : vector<16x64xf32>
    %226 = tpu.matmul %224, %225, %cst_60 {dimension_numbers = #tpu.dot_dimension_numbers<[1], [0], [0], [1], [0, 0, 1, 1], [], []>} : vector<16x32xbf16>, vector<32x64xbf16>, vector<16x64xf32> -> vector<16x64xf32>
    %227 = vector.broadcast %7 : vector<1x64xf32> to vector<16x64xf32>
    %228 = arith.addf %226, %227 : vector<16x64xf32>
    %cst_61 = arith.constant 0.000000e+00 : f32
    %229 = vector.broadcast %cst_61 : f32 to vector<16x64xf32>
    %230 = arith.maximumf %228, %229 : vector<16x64xf32>
    %231 = arith.truncf %230 : vector<16x64xf32> to vector<16x64xbf16>
    %c0_62 = arith.constant 0 : index
    %c0_63 = arith.constant 0 : index
    %232 = vector.load %arg6[%c0_62, %c0_63] : memref<64x32xbf16, #tpu.memory_space<vmem>>, vector<64x32xbf16>
    %cst_64 = arith.constant dense<0.000000e+00> : vector<16x32xf32>
    %233 = tpu.matmul %231, %232, %cst_64 {dimension_numbers = #tpu.dot_dimension_numbers<[1], [0], [0], [1], [0, 0, 1, 1], [], []>} : vector<16x64xbf16>, vector<64x32xbf16>, vector<16x32xf32> -> vector<16x32xf32>
    %234 = vector.broadcast %8 : vector<1x32xf32> to vector<16x32xf32>
    %235 = arith.addf %233, %234 : vector<16x32xf32>
    %236 = arith.addf %201, %235 : vector<16x32xf32>
    %c0_65 = arith.constant 0 : index
    %c0_66 = arith.constant 0 : index
    %237 = vector.load %arg7[%c0_65, %c0_66] : memref<16x32xf32, #tpu.memory_space<vmem>>, vector<16x32xf32>
    tpu.vector_store %arg7[%c0_65, %c0_66], %236 {strides = array<i32>} : memref<16x32xf32, #tpu.memory_space<vmem>>, vector<16x32xf32>,
    return
  }
  func.func @transform_0(%arg0: i32) -> (i32, i32) {
    %c0_i32 = arith.constant 0 : i32
    %c0_i32_0 = arith.constant 0 : i32
    %c0_i32_1 = arith.constant 0 : i32
    return %c0_i32, %c0_i32_0 : i32, i32
  }
  func.func @transform_1(%arg0: i32) -> (i32, i32) {
    %c0_i32 = arith.constant 0 : i32
    %c0_i32_0 = arith.constant 0 : i32
    %c0_i32_1 = arith.constant 0 : i32
    return %c0_i32, %c0_i32_0 : i32, i32
  }
  func.func @transform_2(%arg0: i32) -> (i32, i32) {
    %c0_i32 = arith.constant 0 : i32
    %c0_i32_0 = arith.constant 0 : i32
    %c0_i32_1 = arith.constant 0 : i32
    return %c0_i32, %c0_i32_0 : i32, i32
  }
  func.func @transform_3(%arg0: i32) -> (i32, i32) {
    %c0_i32 = arith.constant 0 : i32
    %c0_i32_0 = arith.constant 0 : i32
    %c0_i32_1 = arith.constant 0 : i32
    return %c0_i32, %c0_i32_0 : i32, i32
  }
  func.func @transform_4(%arg0: i32) -> (i32, i32) {
    %c0_i32 = arith.constant 0 : i32
    %c0_i32_0 = arith.constant 0 : i32
    %c0_i32_1 = arith.constant 0 : i32
    return %c0_i32, %c0_i32_0 : i32, i32
  }
  func.func @transform_5(%arg0: i32) -> (i32, i32) {
    %c0_i32 = arith.constant 0 : i32
    %c0_i32_0 = arith.constant 0 : i32
    %c0_i32_1 = arith.constant 0 : i32
    return %c0_i32, %c0_i32_0 : i32, i32
  }
  func.func @transform_6(%arg0: i32) -> (i32, i32) {
    %c0_i32 = arith.constant 0 : i32
    %c0_i32_0 = arith.constant 0 : i32
    %c0_i32_1 = arith.constant 0 : i32
    return %c0_i32, %c0_i32_0 : i32, i32
  }
}

</mosaic_0001>

<bundles_post_ra>
// kernel: tpu_custom_call.1
= control target key start
LH: loop header
LB: loop body
LE: loop exit
PB: predicated region body
PF: predicated region fallthrough
CT: control target
= control target key end

     0   :  { %11 = vsyncpa [#allocation3], 0  ;;  %s1334_s0 = inlined_call_operand.vmem [shape: f32[16,32], index: 0, kind: input, shape index: {}]   ;;  %s1335_s1 = inlined_call_operand.hbm [shape: f32[8,128], index: 1, kind: input, shape index: {}]   ;;  %s1336_s2 = inlined_call_operand.vmem [shape: bf16[32,96], index: 2, kind: input, shape index: {}]   ;;  %s1337_s3 = inlined_call_operand.vmem [shape: bf16[32,32], index: 3, kind: input, shape index: {}]   ;;  %s1338_s4 = inlined_call_operand.hbm [shape: bf16[32,64], index: 4, kind: input, shape index: {}]   ;;  %s1339_s5 = inlined_call_operand.vmem [shape: bf16[64,32], index: 5, kind: input, shape index: {}]   ;;  %s1340_s6 = inlined_call_operand.hbm [shape: f32[16,32], index: 6, kind: output, shape index: {}]  }
   0x1   :  { %12 = vsyncpa [#allocation6], 0 }
   0x2   :  { %13 = vsyncpa [#allocation4], 0  ;;  %s21_s23 = sshll.u32 %s1335_s1, 4  ;;  %s1079_s24 = smov [#allocation2]   ;;  %s22_s23 = int_to_ptr.hbm [resolvable:$true] %s21_s23 }
   0x3   :  { %s23_s25 = sshll.u32 %s1079_s24, 4  ;;  %s35_s28 = sshll.u32 %s1338_s4, 4  ;;  %s24_s25 = int_to_ptr.vmem [resolvable:$true] %s23_s25  ;;  %s36_s28 = int_to_ptr.hbm [resolvable:$true] %s35_s28 }
   0x4   :  { %26 = dma.hbm_to_vmem [thread:$0]  %s22_s23, 128, %s24_s25, [#allocation3]  }
   0x5   :  { %s1080_s29 = smov [#allocation5]   ;;  %s1081_s7 = smov 64  }
   0x6   :  { %s37_s30 = sshll.u32 %s1080_s29, 4  ;;  %s1082_s8 = smov 4   ;;  %s38_s30 = int_to_ptr.vmem [resolvable:$true] %s37_s30 }
   0x7   :  { %43 = dma.hbm_to_vmem [thread:$0]  %s36_s28, 256, %s38_s30, [#allocation6], %s1081_s7, %s1081_s7, %s1082_s8  }
   0x8   :  { %1073 = dma.done.wait [#allocation3], 128  }
   0x9   :  { %1074 = vsyncadd [#allocation3], 4294967168 }
   0xa   :  { %1075 = dma.done.wait [#allocation6], 256  }
   0xb   :  { %1076 = vsyncadd [#allocation6], 4294967040  ;;  %vm65_vm0 = vcmask 261120   ;;  %v1145_v0 = vld [vmem:[%s1334_s0] sm:$0xff]  ;;  %v1152_v2 = vld [vmem:[%s1334_s0 + $0x8] sm:$0xff]  ;;  %v1083_v4 = vmov 32.0  }
   0xc   :  { %v66_v1 = vsel %vm65_vm0, %v1145_v0, 0.0  ;;  %v69_v3 = vsel %vm65_vm0, %v1152_v2, 0.0  ;;  %959 = vrcp.f32 %v1083_v4  ;;  %v907_v21 = vld [vmem:[%s1336_s2 + $0x8] sm:$0xff]  ;;  %v906_v23 = vld [vmem:[%s1336_s2] sm:$0xff]  ;;  %s1084_s2 = smov 72   ;;  %s1085_s14 = smov 96  }
   0xd   :  { %67 = vadd.xlane.f32.xlu0 %v66_v1  ;;  %150 = vmatpush.bf16.msra.mxu0 %v907_v21  ;;  %v951_v42 = vld [vmem:[#allocation2] ss:$0 sm:$0xff]  ;;  %v952_v47 = vld [vmem:[#allocation2 + $0x1] ss:$0 sm:$0xff]  ;;  %v953_v52 = vld [vmem:[#allocation2 + $0x4] ss:$0 sm:$0xff] }
   0xe   :  { %s1086_s15 = smov 120   ;;  %s1087_s16 = smov 88   ;;  %vm165_vm8 = vcmask 64512   ;;  %vm202_vm9 = vcmask 1043456   ;;  %vm401_vm10 = vcmask 130048   ;;  %vm403_vm11 = vcmask 195584  }
   0xf   :  { %s1088_s17 = smov 112   ;;  %s1089_s18 = smov 80  }
  0x10   :  { %s1090_s19 = smov 104   ;;  %s1091_s20 = smov 56  }
  0x11   :  { %151 = vmatpush.bf16.msra.mxu0 %v906_v23  ;;  %s1092_s21 = smov 48   ;;  %s1093_s22 = smov 40  }
  0x12   :  { %v960_v5 = vpop.eup %959  ;;  %s1094_s23 = smov 16   ;;  %s1095_s24 = smov 8  }
  0x13   :  { %v73_v6 = vmul.f32 32.0, %v960_v5  ;;  %vm77_vm1 = vweird.f32 %v960_v5  ;;  %s1096_s25 = smov 24   ;;  %s1097_s0 = smov [#allocation7]  }
  0x14   :  { %s832_s13 = sshll.u32 %s1340_s6, 4  ;;  %s833_s13 = int_to_ptr.hbm [resolvable:$true] %s832_s13 }
  0x15   :  { %70 = vadd.xlane.f32.xlu0 %v69_v3  ;;  %v74_v7 = vsub.f32 1.0, %v73_v6 }
  0x17   :  { %v75_v8 = vmul.f32 %v960_v5, %v74_v7 }
  0x19   :  { %v76_v9 = vadd.f32 %v960_v5, %v75_v8 }
  0x1b   :  { %v1156_v10 = vsel %vm77_vm1, %v960_v5, %v76_v9 }
  0x80   :  { %v68_v11 = vpop.xlane.xlu0 %67 }
  0x81   :  { %v79_v12 = vmul.f32 %v1156_v10, %v68_v11 }
  0x83   :  { %v81_v13 = vsub.f32 %v1145_v0, %v79_v12 }
  0x85   :  { %v83_v14 = vmul.f32 %v81_v13, %v81_v13 }
  0x87   :  { %v85_v15 = vsel %vm65_vm0, %v83_v14, 0.0 }
  0x88   :  { %86 = vadd.xlane.f32.xlu1 %v85_v15  ;;  %v71_v16 = vpop.xlane.xlu0 %70 }
  0x89   :  { %v80_v17 = vmul.f32 %v1156_v10, %v71_v16 }
  0x8b   :  { %v82_v18 = vsub.f32 %v1152_v2, %v80_v17 }
  0x8d   :  { %v84_v19 = vmul.f32 %v82_v18, %v82_v18 }
  0x8f   :  { %v88_v20 = vsel %vm65_vm0, %v84_v19, 0.0 }
  0x90   :  { %89 = vadd.xlane.f32.xlu1 %v88_v20 }
  0xfb   :  { %v87_v22 = vpop.xlane.xlu1 %86 }
  0xfc   :  { %v91_v24 = vmul.f32 %v87_v22, %v1156_v10 }
  0xfe   :  { %v93_v25 = vadd.f32 1e-05, %v91_v24 }
 0x100   :  { %961 = vrsqrt.f32 %v93_v25  ;;  %vm101_vm3 = vweird.f32 %v93_v25 }
 0x103   :  { %v90_v26 = vpop.xlane.xlu1 %89 }
 0x104   :  { %v92_v27 = vmul.f32 %v90_v26, %v1156_v10 }
 0x106   :  { %v962_v28 = vpop.eup %961  ;;  %v94_v29 = vadd.f32 1e-05, %v92_v27 }
 0x107   :  { %v96_v30 = vmul.f32 %v962_v28, %v93_v25  ;;  %vm102_vm2 = vweird.f32 %v962_v28 }
 0x108   :  { %963 = vrsqrt.f32 %v94_v29  ;;  %vm103_vm4 = vmor %vm101_vm3, %vm102_vm2  ;;  %vm111_vm6 = vweird.f32 %v94_v29  ;;  %vm804_vm3 = vcmask 523264  }
 0x109   :  { %v97_v31 = vmul.f32 %v962_v28, %v96_v30 }
 0x10b   :  { %v98_v32 = vmul.f32 0.5, %v97_v31 }
 0x10d   :  { %v99_v33 = vsub.f32 1.5, %v98_v32 }
 0x10e   :  { %v964_v34 = vpop.eup %963 }
 0x10f   :  { %v100_v35 = vmul.f32 %v962_v28, %v99_v33  ;;  %v106_v36 = vmul.f32 %v964_v34, %v94_v29  ;;  %vm112_vm5 = vweird.f32 %v964_v34 }
 0x110   :  { %vm113_vm7 = vmor %vm111_vm6, %vm112_vm5 }
 0x111   :  { %v107_v37 = vmul.f32 %v964_v34, %v106_v36  ;;  %v104_v38 = vsel %vm103_vm4, %v962_v28, %v100_v35 }
 0x112   :  { %v115_v41 = vmul.f32 %v104_v38, %v81_v13 }
 0x113   :  { %v108_v39 = vmul.f32 0.5, %v107_v37 }
 0x114   :  { %v118_v46 = vmul.f32 %v951_v42, %v115_v41 }
 0x115   :  { %v109_v40 = vsub.f32 1.5, %v108_v39 }
 0x116   :  { %v121_v49 = vadd.f32 %v952_v47, %v118_v46 }
 0x117   :  { %v110_v43 = vmul.f32 %v964_v34, %v109_v40 }
 0x119   :  { %v114_v44 = vsel %vm113_vm7, %v964_v34, %v110_v43 }
 0x11a   :  { %v116_v45 = vmul.f32 %v114_v44, %v82_v18 }
 0x11c   :  { %v119_v48 = vmul.f32 %v951_v42, %v116_v45 }
 0x11e   :  { %v122_v50 = vadd.f32 %v952_v47, %v119_v48 }
 0x120   :  { %v123_v51 = vpack.c.bf16 %v122_v50, %v121_v49 }
 0x122   :  { %854 = vmatmul.msk.bf16.vlgmr.msra.gmra.mxu0 %vm65_vm0, %v123_v51 }
 0x19f   :  { %v153_v53 = vpop.f32.mrf.mxu0 }
 0x1a0   :  { %v154_v54 = vadd.f32 %v953_v52, %v153_v53 }
 0x1a2   :  { %v158_v55 = vmul.f32 0.35355338, %v154_v54  ;;  %v1173_v56 = vpack.c.bf16 %v154_v54, %v154_v54 }
 0x1a4   :  { %v160_v57 = vpack.c.bf16 %v158_v55, %v158_v55  ;;  %334 = vrot.lane.b32.xlu1 %v1173_v56, %s1084_s2  ;;  %163 = vrot.lane.b32.xlu2 %v1173_v56, %s1085_s14 }
 0x1a6   :  { %220 = vrot.lane.b32.xlu0 %v160_v57, %s1086_s15 }
 0x1a7   :  { %v155_v58 = vpop.f32.mrf.mxu0 }
 0x1a8   :  { %v156_v59 = vadd.f32 %v953_v52, %v155_v58 }
 0x1aa   :  { %v1177_v60 = vpack.c.bf16 %v156_v59, %v156_v59  ;;  %v159_v61 = vmul.f32 0.35355338, %v156_v59 }
 0x1ac   :  { %408 = vrot.lane.b32.xlu1 %v1177_v60, %s1085_s14  ;;  %222 = vrot.lane.b32.xlu2 %v1173_v56, %s1087_s16  ;;  %v405_v62 = vpack.c.bf16 %v159_v61, %v159_v61 }
 0x1ae   :  { %276 = vrot.lane.b32.xlu0 %v160_v57, %s1088_s17 }
 0x1b4   :  { %521 = vrot.lane.b32.xlu1 %v1177_v60, %s1089_s18  ;;  %278 = vrot.lane.b32.xlu2 %v1173_v56, %s1089_s18 }
 0x1b6   :  { %577 = vrot.lane.b32.xlu0 %v1177_v60, %s1084_s2  ;;  %s1098_s2 = smov 128  }
 0x1bc   :  { %332 = vrot.lane.b32.xlu2 %v160_v57, %s1090_s19 }
 0x1be   :  { %519 = vrot.lane.b32.xlu0 %v405_v62, %s1088_s17 }
 0x1c4   :  { %465 = vrot.lane.b32.xlu2 %v1177_v60, %s1087_s16 }
 0x1cc   :  { %463 = vrot.lane.b32.xlu2 %v405_v62, %s1086_s15 }
 0x1d4   :  { %575 = vrot.lane.b32.xlu2 %v405_v62, %s1090_s19 }
 0x1fe   :  { %v164_v63 = vpop.permute.xlu2 %163 }
 0x1ff   :  { %v170_v1 = vsel %vm165_vm8, %v164_v63, 0 }
 0x200   :  { %179 = vmatpush.bf16.xpose.msra.mxu1 %v170_v1 }
 0x206   :  { %v223_v3 = vpop.permute.xlu2 %222 }
 0x207   :  { %855 = vmatmul.msk.bf16.vlgmr.msra.gmra.mxu1 %vm165_vm8, %v160_v57  ;;  %v228_v4 = vsel %vm165_vm8, %v223_v3, 0 }
 0x208   :  { %237 = vmatpush.bf16.xpose.msra.mxu3 %v228_v4 }
 0x20e   :  { %v279_v5 = vpop.permute.xlu2 %278 }
 0x20f   :  { %v284_v6 = vsel %vm165_vm8, %v279_v5, 0 }
 0x210   :  { %293 = vmatpush.bf16.xpose.msrb.mxu0 %v284_v6 }
 0x216   :  { %v335_v7 = vpop.permute.xlu1 %334  ;;  %v333_v8 = vpop.permute.xlu2 %332 }
 0x217   :  { %v340_v9 = vsel %vm165_vm8, %v335_v7, 0 }
 0x218   :  { %349 = vmatpush.bf16.xpose.msrb.mxu3 %v340_v9  ;;  %v221_v11 = vpop.permute.xlu0 %220 }
 0x219   :  { %857 = vmatmul.msk.bf16.vlgmr.msra.gmra.mxu3 %vm165_vm8, %v221_v11 }
 0x21e   :  { %v409_v12 = vpop.permute.xlu1 %408  ;;  %v466_v13 = vpop.permute.xlu2 %465 }
 0x21f   :  { %v414_v14 = vsel %vm165_vm8, %v409_v12, 0  ;;  %v471_v15 = vsel %vm165_vm8, %v466_v13, 0 }
 0x220   :  { %423 = vmatpush.bf16.xpose.msra.mxu0 %v414_v14  ;;  %480 = vmatpush.bf16.xpose.msra.mxu3 %v471_v15  ;;  %v277_v16 = vpop.permute.xlu0 %276 }
 0x221   :  { %859 = vmatmul.msk.bf16.vlgmr.msrb.gmra.mxu0 %vm165_vm8, %v277_v16 }
 0x226   :  { %v522_v17 = vpop.permute.xlu1 %521  ;;  %v464_v21 = vpop.permute.xlu2 %463 }
 0x227   :  { %v527_v18 = vsel %vm165_vm8, %v522_v17, 0 }
 0x228   :  { %536 = vmatpush.bf16.xpose.msrb.mxu0 %v527_v18  ;;  %v578_v19 = vpop.permute.xlu0 %577 }
 0x229   :  { %v583_v20 = vsel %vm165_vm8, %v578_v19, 0  ;;  %861 = vmatmul.msk.bf16.vlgmr.msrb.gmra.mxu3 %vm165_vm8, %v333_v8 }
 0x22a   :  { %592 = vmatpush.bf16.xpose.msrb.mxu3 %v583_v20 }
 0x22e   :  { %v576_v23 = vpop.permute.xlu2 %575 }
 0x230   :  { %v520_v22 = vpop.permute.xlu0 %519 }
 0x231   :  { %863 = vmatmul.msk.bf16.vlgmr.msra.gmra.mxu0 %vm165_vm8, %v405_v62 }
 0x239   :  { %865 = vmatmul.msk.bf16.vlgmr.msra.gmra.mxu3 %vm165_vm8, %v464_v21 }
 0x241   :  { %867 = vmatmul.msk.bf16.vlgmr.msrb.gmra.mxu0 %vm165_vm8, %v520_v22 }
 0x249   :  { %869 = vmatmul.msk.bf16.vlgmr.msrb.gmra.mxu3 %vm165_vm8, %v576_v23 }
 0x284   :  { %v181_v24 = vpop.f32.mrf.mxu1 }
 0x285   :  { %v185_v25 = vsel %vm165_vm8, %v181_v24, -inf }
 0x286   :  { %186 = vmax.xlane.f32.xlu2 %v185_v25 }
 0x28c   :  { %v183_v26 = vpop.f32.mrf.mxu1 }
 0x29c   :  { %v239_v27 = vpop.f32.mrf.mxu3 }
 0x29d   :  { %v243_v28 = vsel %vm165_vm8, %v239_v27, -inf }
 0x29e   :  { %244 = vmax.xlane.f32.xlu1 %v243_v28  ;;  %v295_v29 = vpop.f32.mrf.mxu0 }
 0x29f   :  { %v299_v30 = vsel %vm165_vm8, %v295_v29, -inf }
 0x2a0   :  { %300 = vmax.xlane.f32.xlu2 %v299_v30 }
 0x2a4   :  { %v241_v31 = vpop.f32.mrf.mxu3 }
 0x2a6   :  { %v297_v32 = vpop.f32.mrf.mxu0 }
 0x2ac   :  { %v1204_v33 = vpop.f32.mrf.mxu3 }
 0x2ad   :  { %v355_v34 = vsel %vm165_vm8, %v1204_v33, -inf }
 0x2ae   :  { %356 = vmax.xlane.f32.xlu0 %v355_v34  ;;  %v1208_v35 = vpop.f32.mrf.mxu0 }
 0x2af   :  { %v429_v47 = vsel %vm165_vm8, %v1208_v35, -inf }
 0x2b4   :  { %v353_v36 = vpop.f32.mrf.mxu3 }
 0x2b6   :  { %v427_v37 = vpop.f32.mrf.mxu0 }
 0x2b7   :  { %197 = vrot.lane.b32.xlu1 %v1173_v56, %s1081_s7 }
 0x2b8   :  { %255 = vrot.lane.b32.xlu2 %v1173_v56, %s1091_s20 }
 0x2bc   :  { %v482_v38 = vpop.f32.mrf.mxu3 }
 0x2bd   :  { %v486_v46 = vsel %vm165_vm8, %v482_v38, -inf }
 0x2be   :  { %v538_v39 = vpop.f32.mrf.mxu0 }
 0x2bf   :  { %v542_v40 = vsel %vm165_vm8, %v538_v39, -inf }
 0x2c0   :  { %543 = vmax.xlane.f32.xlu0 %v542_v40 }
 0x2c4   :  { %v484_v41 = vpop.f32.mrf.mxu3 }
 0x2c6   :  { %v540_v42 = vpop.f32.mrf.mxu0 }
 0x2cc   :  { %v1215_v43 = vpop.f32.mrf.mxu3 }
 0x2cd   :  { %v598_v44 = vsel %vm165_vm8, %v1215_v43, -inf }
 0x2ce   :  { %599 = vmax.xlane.f32.xlu0 %v598_v44 }
 0x2d4   :  { %v596_v45 = vpop.f32.mrf.mxu3 }
 0x2e1   :  { %487 = vmax.xlane.f32.xlu1 %v486_v46  ;;  %430 = vmax.xlane.f32.xlu2 %v429_v47 }
 0x2f9   :  { %311 = vrot.lane.b32.xlu2 %v1173_v56, %s1092_s21  ;;  %v187_v48 = vpop.xlane.xlu2 %186 }
 0x2fa   :  { %v188_v49 = vsub.f32 %v181_v24, %v187_v48 }
 0x2fc   :  { %v189_v50 = vmul.f32 1.442695, %v188_v49 }
 0x2fe   :  { %965 = vpow2.f32 %v189_v50 }
 0x304   :  { %v1224_v51 = vpop.eup %965 }
 0x305   :  { %v191_v52 = vsel %vm165_vm8, %v1224_v51, 0.0 }
 0x306   :  { %192 = vadd.xlane.f32.xlu0 %v191_v52 }
 0x311   :  { %v245_v53 = vpop.xlane.xlu1 %244 }
 0x312   :  { %v246_v54 = vsub.f32 %v239_v27, %v245_v53 }
 0x313   :  { %v301_v55 = vpop.xlane.xlu2 %300 }
 0x314   :  { %v247_v57 = vmul.f32 1.442695, %v246_v54  ;;  %v302_v58 = vsub.f32 %v295_v29, %v301_v55 }
 0x316   :  { %v303_v59 = vmul.f32 1.442695, %v302_v58  ;;  %967 = vpow2.f32 %v247_v57 }
 0x318   :  { %969 = vpow2.f32 %v303_v59 }
 0x31a   :  { %367 = vrot.lane.b32.xlu0 %v1173_v56, %s1093_s22 }
 0x31b   :  { %v256_v3 = vpop.permute.xlu2 %255 }
 0x31c   :  { %v1230_v61 = vpop.eup %967  ;;  %v261_v56 = vsel %vm202_vm9, %v256_v3, 0 }
 0x31d   :  { %v249_v1 = vsel %vm165_vm8, %v1230_v61, 0.0 }
 0x31e   :  { %v1232_v62 = vpop.eup %969 }
 0x31f   :  { %v305_v63 = vsel %vm165_vm8, %v1232_v62, 0.0 }
 0x320   :  { %306 = vadd.xlane.f32.xlu1 %v305_v63 }
 0x321   :  { %v357_v6 = vpop.xlane.xlu0 %356 }
 0x322   :  { %250 = vadd.xlane.f32.xlu2 %v249_v1  ;;  %v358_v17 = vsub.f32 %v1204_v33, %v357_v6 }
 0x324   :  { %v359_v18 = vmul.f32 1.442695, %v358_v17 }
 0x329   :  { %v198_v4 = vpop.permute.xlu1 %197 }
 0x32a   :  { %v204_v5 = vsel %vm202_vm9, %v198_v4, 0 }
 0x32b   :  { %213 = vmatpush.bf16.msra.mxu2 %v204_v5 }
 0x32f   :  { %270 = vmatpush.bf16.msrb.mxu2 %v261_v56 }
 0x333   :  { %v544_v7 = vpop.xlane.xlu0 %543 }
 0x334   :  { %v545_v8 = vsub.f32 %v538_v39, %v544_v7 }
 0x336   :  { %v546_v9 = vmul.f32 1.442695, %v545_v8 }
 0x338   :  { %971 = vpow2.f32 %v546_v9 }
 0x339   :  { %498 = vrot.lane.b32.xlu1 %v1177_v60, %s1091_s20 }
 0x33a   :  { %441 = vrot.lane.b32.xlu2 %v1177_v60, %s1081_s7 }
 0x33e   :  { %v1247_v22 = vpop.eup %971 }
 0x33f   :  { %v548_v28 = vsel %vm165_vm8, %v1247_v22, 0.0 }
 0x341   :  { %v600_v20 = vpop.xlane.xlu0 %599 }
 0x342   :  { %v601_v25 = vsub.f32 %v1215_v43, %v600_v20 }
 0x344   :  { %v602_v29 = vmul.f32 1.442695, %v601_v25 }
 0x354   :  { %v488_v11 = vpop.xlane.xlu1 %487  ;;  %v431_v12 = vpop.xlane.xlu2 %430 }
 0x355   :  { %v489_v13 = vsub.f32 %v482_v38, %v488_v11  ;;  %v432_v14 = vsub.f32 %v1208_v35, %v431_v12 }
 0x357   :  { %v490_v15 = vmul.f32 1.442695, %v489_v13  ;;  %v433_v16 = vmul.f32 1.442695, %v432_v14 }
 0x359   :  { %973 = vpow2.f32 %v490_v15 }
 0x35a   :  { %975 = vpow2.f32 %v433_v16 }
 0x35b   :  { %977 = vpow2.f32 %v359_v18 }
 0x35c   :  { %v312_v19 = vpop.permute.xlu2 %311  ;;  %979 = vpow2.f32 %v602_v29 }
 0x35d   :  { %v317_v21 = vsel %vm202_vm9, %v312_v19, 0 }
 0x35e   :  { %326 = vmatpush.bf16.msrb.mxu1 %v317_v21 }
 0x35f   :  { %v1249_v23 = vpop.eup %973 }
 0x360   :  { %v976_v24 = vpop.eup %975  ;;  %v492_v27 = vsel %vm165_vm8, %v1249_v23, 0.0 }
 0x361   :  { %v435_v26 = vsel %vm165_vm8, %v976_v24, 0.0  ;;  %v978_v30 = vpop.eup %977 }
 0x362   :  { %436 = vadd.xlane.f32.xlu0 %v435_v26  ;;  %v361_v31 = vsel %vm165_vm8, %v978_v30, 0.0  ;;  %v1258_v32 = vpop.eup %979 }
 0x363   :  { %493 = vadd.xlane.f32.xlu2 %v492_v27  ;;  %549 = vadd.xlane.f32.xlu1 %v548_v28  ;;  %v604_v33 = vsel %vm165_vm8, %v1258_v32, 0.0 }
 0x36a   :  { %362 = vadd.xlane.f32.xlu0 %v361_v31 }
 0x372   :  { %605 = vadd.xlane.f32.xlu0 %v604_v33 }
 0x379   :  { %v193_v34 = vpop.xlane.xlu0 %192 }
 0x37a   :  { %981 = vrcp.f32 %v193_v34  ;;  %v909_v34 = vld [vmem:[%s1337_s3 + $0x8] sm:$0xff] }
 0x37b   :  { %554 = vrot.lane.b32.xlu2 %v1177_v60, %s1092_s21  ;;  %673 = vmatpush.bf16.msra.mxu0 %v909_v34 }
 0x380   :  { %v982_v35 = vpop.eup %981 }
 0x381   :  { %v195_v36 = vmul.f32 %v982_v35, %v1224_v51  ;;  %v908_v35 = vld [vmem:[%s1337_s3] sm:$0xff] }
 0x382   :  { %674 = vmatpush.bf16.msra.mxu0 %v908_v35 }
 0x383   :  { %v196_v37 = vpack.c.bf16 %v195_v36, %v195_v36 }
 0x385   :  { %856 = vmatmul.msk.bf16.vlgmr.msra.gmra.mxu2 %vm165_vm8, %v196_v37 }
 0x386   :  { %610 = vrot.lane.b32.xlu0 %v1177_v60, %s1093_s22 }
 0x38c   :  { %v368_v38 = vpop.permute.xlu0 %367 }
 0x38d   :  { %v373_v39 = vsel %vm202_vm9, %v368_v38, 0 }
 0x38e   :  { %382 = vmatpush.bf16.msra.mxu2 %v373_v39 }
 0x393   :  { %v307_v40 = vpop.xlane.xlu1 %306 }
 0x394   :  { %983 = vrcp.f32 %v307_v40 }
 0x395   :  { %v251_v41 = vpop.xlane.xlu2 %250 }
 0x396   :  { %985 = vrcp.f32 %v251_v41 }
 0x39a   :  { %v984_v42 = vpop.eup %983 }
 0x39b   :  { %v309_v43 = vmul.f32 %v984_v42, %v1232_v62 }
 0x39c   :  { %v986_v44 = vpop.eup %985 }
 0x39d   :  { %v253_v45 = vmul.f32 %v986_v44, %v1230_v61  ;;  %v442_v46 = vpop.permute.xlu2 %441  ;;  %v310_v47 = vpack.c.bf16 %v309_v43, %v309_v43 }
 0x39e   :  { %v447_v48 = vsel %vm202_vm9, %v442_v46, 0 }
 0x39f   :  { %860 = vmatmul.msk.bf16.vlgmr.msrb.gmra.mxu1 %vm165_vm8, %v310_v47  ;;  %v254_v60 = vpack.c.bf16 %v253_v45, %v253_v45 }
 0x3a0   :  { %456 = vmatpush.bf16.msra.mxu1 %v447_v48 }
 0x3a1   :  { %858 = vmatmul.msk.bf16.vlgmr.msrb.gmra.mxu2 %vm165_vm8, %v254_v60 }
 0x3ab   :  { %v499_v49 = vpop.permute.xlu1 %498 }
 0x3ac   :  { %v504_v50 = vsel %vm202_vm9, %v499_v49, 0 }
 0x3ad   :  { %513 = vmatpush.bf16.msrb.mxu2 %v504_v50 }
 0x3d5   :  { %v437_v51 = vpop.xlane.xlu0 %436 }
 0x3d6   :  { %987 = vrcp.f32 %v437_v51  ;;  %v494_v52 = vpop.xlane.xlu2 %493  ;;  %v550_v59 = vpop.xlane.xlu1 %549  ;;  %v954_v51 = vld [vmem:[#allocation2 + $0x5] ss:$0 sm:$0xff] }
 0x3dc   :  { %v988_v53 = vpop.eup %987 }
 0x3dd   :  { %v439_v54 = vmul.f32 %v988_v53, %v976_v24  ;;  %v363_v55 = vpop.xlane.xlu0 %362 }
 0x3de   :  { %989 = vrcp.f32 %v363_v55  ;;  %v555_v57 = vpop.permute.xlu2 %554 }
 0x3df   :  { %v440_v58 = vpack.c.bf16 %v439_v54, %v439_v54  ;;  %v560_v61 = vsel %vm202_vm9, %v555_v57, 0  ;;  %991 = vrcp.f32 %v550_v59 }
 0x3e0   :  { %569 = vmatpush.bf16.msrb.mxu1 %v560_v61  ;;  %993 = vrcp.f32 %v494_v52 }
 0x3e1   :  { %864 = vmatmul.msk.bf16.vlgmr.msra.gmra.mxu1 %vm165_vm8, %v440_v58 }
 0x3e4   :  { %v990_v62 = vpop.eup %989 }
 0x3e5   :  { %v365_v63 = vmul.f32 %v990_v62, %v978_v30  ;;  %v992_v3 = vpop.eup %991  ;;  %v606_v6 = vpop.xlane.xlu0 %605 }
 0x3e6   :  { %v552_v4 = vmul.f32 %v992_v3, %v1247_v22  ;;  %v994_v56 = vpop.eup %993  ;;  %995 = vrcp.f32 %v606_v6 }
 0x3e7   :  { %v366_v1 = vpack.c.bf16 %v365_v63, %v365_v63  ;;  %v496_v7 = vmul.f32 %v994_v56, %v1249_v23 }
 0x3e8   :  { %v553_v5 = vpack.c.bf16 %v552_v4, %v552_v4 }
 0x3e9   :  { %862 = vmatmul.msk.bf16.vlgmr.msra.gmra.mxu2 %vm165_vm8, %v366_v1  ;;  %v497_v8 = vpack.c.bf16 %v496_v7, %v496_v7  ;;  %v911_v7 = vld [vmem:[#allocation5 + $0x8] sm:$0xff] }
 0x3ea   :  { %760 = vmatpush.bf16.msra.mxu1 %v911_v7 }
 0x3ec   :  { %v996_v12 = vpop.eup %995 }
 0x3ed   :  { %v608_v13 = vmul.f32 %v996_v12, %v1258_v32 }
 0x3ef   :  { %v609_v14 = vpack.c.bf16 %v608_v13, %v608_v13 }
 0x3f1   :  { %868 = vmatmul.msk.bf16.vlgmr.msrb.gmra.mxu1 %vm165_vm8, %v553_v5 }
 0x3f8   :  { %v611_v9 = vpop.permute.xlu0 %610 }
 0x3f9   :  { %v616_v11 = vsel %vm202_vm9, %v611_v9, 0  ;;  %866 = vmatmul.msk.bf16.vlgmr.msrb.gmra.mxu2 %vm165_vm8, %v497_v8 }
 0x3fa   :  { %625 = vmatpush.bf16.msra.mxu2 %v616_v11  ;;  %v910_v11 = vld [vmem:[#allocation5] sm:$0xff] }
 0x3fb   :  { %761 = vmatpush.bf16.msra.mxu1 %v910_v11 }
 0x408   :  { %v215_v15 = vpop.f32.mrf.mxu2 }
 0x409   :  { %870 = vmatmul.msk.bf16.vlgmr.msra.gmra.mxu2 %vm165_vm8, %v609_v14 }
 0x410   :  { %v217_v16 = vpop.f32.mrf.mxu2 }
 0x41c   :  { %v328_v17 = vpop.f32.mrf.mxu1 }
 0x424   :  { %v272_v18 = vpop.f32.mrf.mxu2  ;;  %v330_v19 = vpop.f32.mrf.mxu1 }
 0x42c   :  { %v274_v20 = vpop.f32.mrf.mxu2 }
 0x45e   :  { %v458_v21 = vpop.f32.mrf.mxu1 }
 0x466   :  { %v460_v22 = vpop.f32.mrf.mxu1 }
 0x46c   :  { %v384_v23 = vpop.f32.mrf.mxu2 }
 0x46e   :  { %v571_v24 = vpop.f32.mrf.mxu1 }
 0x46f   :  { %v936_v25 = vpack.i.bf16 %v571_v24, %v328_v17 }
 0x471   :  { %937 = vrot.lane.b32.xlu2 %v936_v25, %s1094_s23 }
 0x474   :  { %v386_v26 = vpop.f32.mrf.mxu2 }
 0x476   :  { %v573_v27 = vpop.f32.mrf.mxu1 }
 0x47c   :  { %v515_v28 = vpop.f32.mrf.mxu2 }
 0x47d   :  { %v941_v29 = vpack.i.bf16 %v515_v28, %v272_v18  ;;  %v955_v28 = vld [vmem:[#allocation2 + $0x2] ss:$0 sm:$0xff] }
 0x47f   :  { %942 = vrot.lane.b32.xlu0 %v941_v29, %s1095_s24 }
 0x484   :  { %v517_v30 = vpop.f32.mrf.mxu2 }
 0x48c   :  { %v627_v31 = vpop.f32.mrf.mxu2 }
 0x48d   :  { %v946_v32 = vpack.i.bf16 %v627_v31, %v384_v23  ;;  %v956_v31 = vld [vmem:[#allocation2 + $0x3] ss:$0 sm:$0xff] }
 0x48f   :  { %947 = vrot.lane.b32.xlu0 %v946_v32, %s1096_s25 }
 0x494   :  { %v629_v33 = vpop.f32.mrf.mxu2 }
 0x4cb   :  { %v938_v39 = vpop.permute.xlu2 %937 }
 0x4cc   :  { %v940_v42 = vunpack.i.h.bf16 %v938_v39  ;;  %v939_v43 = vunpack.i.l.bf16 %v938_v39  ;;  %v914_v39 = vld [vmem:[%s1339_s5 + $0x10] sm:$0xff] }
 0x4f1   :  { %v943_v36 = vpop.permute.xlu0 %942 }
 0x4f2   :  { %v945_v37 = vunpack.i.h.bf16 %v943_v36  ;;  %v944_v38 = vunpack.i.l.bf16 %v943_v36 }
 0x4f4   :  { %v400_v40 = vsel %vm165_vm8, %v215_v15, %v944_v38  ;;  %v643_v41 = vsel %vm165_vm8, %v458_v21, %v945_v37  ;;  %v915_v38 = vld [vmem:[%s1339_s5 + $0x18] sm:$0xff] }
 0x4f5   :  { %v402_v47 = vsel %vm401_vm10, %v400_v40, %v939_v43  ;;  %v644_v48 = vsel %vm401_vm10, %v643_v41, %v940_v42  ;;  %812 = vmatpush.bf16.msra.mxu3 %v915_v38  ;;  %v913_v40 = vld [vmem:[%s1339_s5 + $0x8] sm:$0xff]  ;;  %v912_v41 = vld [vmem:[%s1339_s5] sm:$0xff]  ;;  %s830_s5 = sshll.u32 %s1097_s0, 4  ;;  %s831_s5 = int_to_ptr.vmem [resolvable:$true] %s830_s5 }
 0x4f6   :  { %v957_v43 = vld [vmem:[#allocation2 + $0x6] ss:$0 sm:$0xff] }
 0x4f9   :  { %813 = vmatpush.bf16.msra.mxu3 %v914_v39 }
 0x4fd   :  { %814 = vmatpush.bf16.msra.mxu3 %v913_v40 }
 0x501   :  { %v948_v44 = vpop.permute.xlu0 %947  ;;  %815 = vmatpush.bf16.msra.mxu3 %v912_v41 }
 0x502   :  { %v950_v45 = vunpack.i.h.bf16 %v948_v44  ;;  %v949_v46 = vunpack.i.l.bf16 %v948_v44 }
 0x504   :  { %v404_v60 = vsel %vm403_vm11, %v402_v47, %v949_v46  ;;  %v645_v49 = vsel %vm403_vm11, %v644_v48, %v950_v45 }
 0x505   :  { %v646_v50 = vpack.c.bf16 %v645_v49, %v404_v60  ;;  %v958_v49 = vld [vmem:[#allocation2 + $0x7] ss:$0 sm:$0xff] }
 0x507   :  { %879 = vmatmul.msk.bf16.vlgmr.msra.gmra.mxu0 %vm65_vm0, %v646_v50 }
 0x584   :  { %v676_v52 = vpop.f32.mrf.mxu0 }
 0x585   :  { %v677_v53 = vadd.f32 %v954_v51, %v676_v52 }
 0x587   :  { %v1296_v54 = vadd.f32 %v677_v53, %v1145_v0 }
 0x589   :  { %v683_v55 = vsel %vm65_vm0, %v1296_v54, 0.0 }
 0x58a   :  { %684 = vadd.xlane.f32.xlu2 %v683_v55 }
 0x58c   :  { %v678_v57 = vpop.f32.mrf.mxu0 }
 0x58d   :  { %v679_v58 = vadd.f32 %v954_v51, %v678_v57 }
 0x58f   :  { %v1301_v59 = vadd.f32 %v679_v58, %v1152_v2 }
 0x591   :  { %v686_v61 = vsel %vm65_vm0, %v1301_v59, 0.0 }
 0x592   :  { %687 = vadd.xlane.f32.xlu0 %v686_v61 }
 0x5fd   :  { %v685_v62 = vpop.xlane.xlu2 %684 }
 0x5fe   :  { %v689_v63 = vmul.f32 %v685_v62, %v1156_v10 }
 0x600   :  { %v691_v1 = vsub.f32 %v1296_v54, %v689_v63 }
 0x602   :  { %v693_v0 = vmul.f32 %v691_v1, %v691_v1 }
 0x604   :  { %v695_v3 = vsel %vm65_vm0, %v693_v0, 0.0 }
 0x605   :  { %v688_v4 = vpop.xlane.xlu0 %687  ;;  %696 = vadd.xlane.f32.xlu1 %v695_v3 }
 0x606   :  { %v690_v5 = vmul.f32 %v688_v4, %v1156_v10 }
 0x608   :  { %v692_v56 = vsub.f32 %v1301_v59, %v690_v5 }
 0x60a   :  { %v694_v2 = vmul.f32 %v692_v56, %v692_v56 }
 0x60c   :  { %v698_v6 = vsel %vm65_vm0, %v694_v2, 0.0 }
 0x60d   :  { %699 = vadd.xlane.f32.xlu1 %v698_v6 }
 0x678   :  { %v697_v8 = vpop.xlane.xlu1 %696 }
 0x679   :  { %v701_v9 = vmul.f32 %v697_v8, %v1156_v10 }
 0x67b   :  { %v703_v12 = vadd.f32 1e-05, %v701_v9 }
 0x67d   :  { %997 = vrsqrt.f32 %v703_v12  ;;  %vm711_vm13 = vweird.f32 %v703_v12 }
 0x680   :  { %v700_v13 = vpop.xlane.xlu1 %699 }
 0x681   :  { %v702_v14 = vmul.f32 %v700_v13, %v1156_v10 }
 0x683   :  { %v998_v15 = vpop.eup %997  ;;  %v704_v16 = vadd.f32 1e-05, %v702_v14 }
 0x684   :  { %v706_v17 = vmul.f32 %v998_v15, %v703_v12  ;;  %vm712_vm12 = vweird.f32 %v998_v15 }
 0x685   :  { %999 = vrsqrt.f32 %v704_v16  ;;  %vm713_vm14 = vmor %vm711_vm13, %vm712_vm12  ;;  %vm721_vm1 = vweird.f32 %v704_v16 }
 0x686   :  { %v707_v18 = vmul.f32 %v998_v15, %v706_v17 }
 0x688   :  { %v708_v19 = vmul.f32 0.5, %v707_v18 }
 0x68a   :  { %v709_v20 = vsub.f32 1.5, %v708_v19 }
 0x68b   :  { %v1000_v21 = vpop.eup %999 }
 0x68c   :  { %v710_v22 = vmul.f32 %v998_v15, %v709_v20  ;;  %v716_v23 = vmul.f32 %v1000_v21, %v704_v16  ;;  %vm722_vm15 = vweird.f32 %v1000_v21 }
 0x68d   :  { %vm723_vm2 = vmor %vm721_vm1, %vm722_vm15 }
 0x68e   :  { %v717_v24 = vmul.f32 %v1000_v21, %v716_v23  ;;  %v714_v25 = vsel %vm713_vm14, %v998_v15, %v710_v22 }
 0x68f   :  { %v725_v10 = vmul.f32 %v714_v25, %v691_v1 }
 0x690   :  { %v718_v26 = vmul.f32 0.5, %v717_v24 }
 0x691   :  { %v728_v32 = vmul.f32 %v955_v28, %v725_v10 }
 0x692   :  { %v719_v27 = vsub.f32 1.5, %v718_v26 }
 0x693   :  { %v731_v35 = vadd.f32 %v956_v31, %v728_v32 }
 0x694   :  { %v720_v29 = vmul.f32 %v1000_v21, %v719_v27 }
 0x696   :  { %v724_v30 = vsel %vm723_vm2, %v1000_v21, %v720_v29 }
 0x697   :  { %v726_v33 = vmul.f32 %v724_v30, %v692_v56 }
 0x699   :  { %v729_v34 = vmul.f32 %v955_v28, %v726_v33 }
 0x69b   :  { %v732_v36 = vadd.f32 %v956_v31, %v729_v34 }
 0x69d   :  { %v733_v37 = vpack.c.bf16 %v732_v36, %v731_v35 }
 0x69f   :  { %888 = vmatmul.msk.bf16.vlgmr.msra.gmra.mxu1 %vm65_vm0, %v733_v37 }
 0x71c   :  { %v763_v42 = vpop.f32.mrf.mxu1 }
 0x71d   :  { %v764_v44 = vadd.f32 %v957_v43, %v763_v42 }
 0x71f   :  { %v768_v47 = vmax.f32 %v764_v44, 0.0 }
 0x724   :  { %v765_v45 = vpop.f32.mrf.mxu1 }
 0x725   :  { %v766_v46 = vadd.f32 %v957_v43, %v765_v45 }
 0x727   :  { %v769_v48 = vmax.f32 %v766_v46, 0.0 }
 0x729   :  { %v770_v60 = vpack.c.bf16 %v769_v48, %v768_v47 }
 0x72b   :  { %905 = vmatmul.msk.bf16.vlgmr.msra.gmra.mxu3 %vm804_vm3, %v770_v60 }
 0x7ae   :  { %v817_v50 = vpop.f32.mrf.mxu3 }
 0x7af   :  { %v818_v51 = vadd.f32 %v958_v49, %v817_v50 }
 0x7b1   :  { %v822_v52 = vadd.f32 %v818_v51, %v1296_v54 }
 0x7b3   :  { %824 = vst.msk [vmem:[#allocation7] sm:$0xff] %vm65_vm0, %v822_v52 }
 0x7b6   :  { %v819_v53 = vpop.f32.mrf.mxu3 }
 0x7b7   :  { %v820_v55 = vadd.f32 %v958_v49, %v819_v53 }
 0x7b9   :  { %v823_v57 = vadd.f32 %v820_v55, %v1301_v59 }
 0x7bb   :  { %825 = vst.msk [vmem:[#allocation7 + $0x8] sm:$0xff] %vm65_vm0, %v823_v57 }
 0x7bc   :  { %838 = dma.vmem_to_hbm [thread:$0]  %s831_s5, 256, %s833_s13, [#allocation4], %s1098_s2, %s1098_s2, %s1095_s24  }
 0x7bd   :  { %1077 = dma.done.wait [#allocation4], 256  }
 0x7be   :  { %1078 = vsyncadd [#allocation4], 4294967040 }
 0x7bf   :  { %843 = vsyncpa [#allocation3], 1 }
 0x7c0   :  { %844 = vsyncpa [#allocation6], 1 }
 0x7c1   :  { %845 = vsyncpa [#allocation4], 1 }

</bundles_post_ra>
